<compile_context>
chip_gen: v7x
topology: tpu7x:2x2x1
jax: 0.10.0
libtpu: 0.0.40
codegen_flags: <defaults>
</compile_context>

<pallas_src>
import jax
import jax.numpy as jnp
from jax import lax
from jax.experimental import pallas as pl
from jax.experimental.pallas import tpu as pltpu

N_EMBD = 128                       # n_embd from the module
BLOCK_SIZE = 128                   # tril buffer extent (>= T in this script)
NEG_INF = -1e30                    # finite large-negative mask value
VMEM_BUDGET_BYTES = 12 * 1024 * 1024   # per-step live-set budget (safe under
                                       # the 16 MiB v5e default scoped limit)


def _head_kernel(x_ref, w_ref, o_ref):
    # x_ref: (BB*T, C) input dtype   w_ref: (C, 3H) bf16   o_ref: (BB, T, H)
    BB, T, H = o_ref.shape

    # In-kernel cast to bf16 (no standalone HBM cast pass in the wrapper).
    x = x_ref[...].astype(jnp.bfloat16)                         # (BB*T, C)
    w = w_ref[...]                                              # (C, 3H)

    # Fused K/Q/V projection: one flattened M = BB*T matmul, f32 accumulation.
    kqv = jnp.dot(x, w, preferred_element_type=jnp.float32)     # (BB*T, 3H)
    kqv = kqv.reshape(BB, T, 3 * H)                             # tile-aligned view

    # Attention scale 1/sqrt(n_embd) is pre-folded into the Q weight columns.
    k = kqv[:, :, 0:H].astype(jnp.bfloat16)
    q = kqv[:, :, H:2 * H].astype(jnp.bfloat16)
    v = kqv[:, :, 2 * H:3 * H].astype(jnp.bfloat16)

    # Attention scores: contract over H directly (no explicit k transpose).
    wei = jnp.einsum("bqh,bkh->bqk", q, k,
                     preferred_element_type=jnp.float32)        # (BB, T, T)

    # Causal mask (tril == 0 -> large negative).
    row = lax.broadcasted_iota(jnp.int32, (T, T), 0)
    col = lax.broadcasted_iota(jnp.int32, (T, T), 1)
    wei = jnp.where((col <= row)[None, :, :], wei, jnp.float32(NEG_INF))

    # Softmax along the key axis (EUP exp, approx reciprocal for the denom).
    wei = wei - jnp.max(wei, axis=-1, keepdims=True)
    p = jnp.exp(wei)
    p = p * pl.reciprocal(jnp.sum(p, axis=-1, keepdims=True), approx=True)

    # Dropout: identity in eval mode.

    out = jnp.einsum("bqk,bkh->bqh", p.astype(jnp.bfloat16), v,
                     preferred_element_type=jnp.float32)        # (BB, T, H)
    o_ref[...] = out.astype(o_ref.dtype)


def _num_tensorcores():
    """1 TC/chip on v5e/v6e, 2 on v7x.  Guarded heuristic; defaults to 1."""
    try:
        kind = jax.devices()[0].device_kind.lower()
        return 2 if ("v7" in kind or "7x" in kind) else 1
    except Exception:
        return 1


def _vmem_bytes_per_step(bb, T, C, H, x_bytes, out_bytes):
    """Rough per-grid-step live-set estimate (double-buffered I/O tiles)."""
    x_tile   = bb * T * C * x_bytes * 2        # input tile, 2 pipeline buffers
    w_tile   = C * 3 * H * 2 * 2               # bf16 weights (constant index)
    kqv_f32  = bb * T * 3 * H * 4              # projection accumulator
    kqv_bf16 = bb * T * 3 * H * 2              # q/k/v bf16 copies
    scores   = bb * T * T * 4 * 2              # wei + p (f32)
    acc      = bb * T * H * 4                  # f32 output accumulator
    out_tile = bb * T * H * out_bytes * 2      # output tile, 2 buffers
    return x_tile + w_tile + kqv_f32 + kqv_bf16 + scores + acc + out_tile


def _pick_batch_block(B, T, C, H, x_bytes, out_bytes, num_tc):
    """Largest divisor of B whose per-step live set fits the VMEM budget.
    No forced minimum step count on single-TC chips; prefer an even number of
    grid steps on dual-TC chips so neither TensorCore idles on the tail."""
    divisors = [d for d in range(1, B + 1) if B % d == 0]
    fits = [d for d in divisors
            if _vmem_bytes_per_step(d, T, C, H, x_bytes, out_bytes)
            <= VMEM_BUDGET_BYTES]
    if not fits:
        fits = [1]
    if num_tc >= 2:
        even = [d for d in fits if (B // d) % 2 == 0]
        if even:
            return max(even)
    return max(fits)


def prepare_head_weights(wk_t, wq_t, wv_t):
    """One-time weight prep (hoisted out of the per-call path):
    fuse K/Q/V weights into a (C, 3H) bf16 slab and fold the 1/sqrt(n_embd)
    attention scale into the Q columns."""
    C = wk_t.shape[0]
    scale = jnp.float32(C) ** jnp.float32(-0.5)   # module uses C = n_embd
    w = jnp.concatenate([wk_t, wq_t * scale, wv_t], axis=1)
    return w.astype(jnp.bfloat16)


def head_forward(x, w_kqv):
    """x: (B, T, C);  w_kqv: (C, 3H) bf16 from prepare_head_weights."""
    B, T, C = x.shape
    assert C == N_EMBD
    assert T <= BLOCK_SIZE
    assert w_kqv.shape[0] == C and w_kqv.shape[1] % 3 == 0
    H = w_kqv.shape[1] // 3

    num_tc = _num_tensorcores()
    BB = _pick_batch_block(B, T, C, H, x.dtype.itemsize, x.dtype.itemsize,
                           num_tc)

    # Free, layout-compatible flatten: one dense M = BB*T projection matmul
    # per grid step instead of BB separate M = T matmuls.
    x2d = x.reshape(B * T, C)

    return pl.pallas_call(
        _head_kernel,
        out_shape=jax.ShapeDtypeStruct((B, T, H), x.dtype),
        grid_spec=pltpu.PrefetchScalarGridSpec(
            num_scalar_prefetch=0,
            grid=(B // BB,),
            in_specs=[
                pl.BlockSpec((BB * T, C), lambda b: (b, 0)),     # x rows block
                pl.BlockSpec((C, 3 * H), lambda b: (0, 0)),      # fused Wkqv
            ],
            out_specs=pl.BlockSpec((BB, T, H), lambda b: (b, 0, 0)),
        ),
        compiler_params=pltpu.CompilerParams(
            dimension_semantics=("parallel",)),
    )(x2d, w_kqv)


def _reference(x, wk_t, wq_t, wv_t):
    B, T, C = x.shape
    k = x @ wk_t
    q = x @ wq_t
    v = x @ wv_t
    wei = (q @ jnp.swapaxes(k, -2, -1)) * (C ** -0.5)
    mask = jnp.tril(jnp.ones((T, T), dtype=bool))
    wei = jnp.where(mask, wei, -jnp.inf)
    wei = jax.nn.softmax(wei, axis=-1)
    return wei @ v


if __name__ == "__main__":
    key = jax.random.PRNGKey(0)
    kx, kk, kq, kv = jax.random.split(key, 4)

    B, T, C = 2, 8, N_EMBD
    head_size = 32

    x = jax.random.normal(kx, (B, T, C), dtype=jnp.float32)

    # nn.Linear(n_embd, head_size, bias=False) weight has shape (head_size, n_embd);
    # init like PyTorch (uniform(-1/sqrt(fan_in), 1/sqrt(fan_in))) then transpose.
    bound = 1.0 / (C ** 0.5)
    wk = jax.random.uniform(kk, (head_size, C), jnp.float32, -bound, bound)
    wq = jax.random.uniform(kq, (head_size, C), jnp.float32, -bound, bound)
    wv = jax.random.uniform(kv, (head_size, C), jnp.float32, -bound, bound)
    wk_t, wq_t, wv_t = wk.T, wq.T, wv.T                      # (C, H)

    # One-time weight prep (fuse + scale fold + bf16 cast), then forward.
    w_kqv = prepare_head_weights(wk_t, wq_t, wv_t)
    out = head_forward(x, w_kqv)
    out = jax.block_until_ready(out)

    ref = _reference(x, wk_t, wq_t, wv_t)
    assert out.shape == (B, T, head_size)
    # bf16 matmul operands (f32 accumulation) -> loosened tolerance vs f32 reference.
    assert jnp.allclose(out, ref, atol=3e-2, rtol=3e-2), "mismatch vs reference"

    print("KERNEL_OK")
</pallas_src>

<mosaic_0001>
module attributes {stable_mosaic.version = 11 : i64} {
  func.func @_head_kernel(%arg0: i32, %arg1: memref<16x128xf32, #tpu.memory_space<vmem>>, %arg2: memref<128x96xbf16, #tpu.memory_space<vmem>>, %arg3: memref<2x8x32xf32, #tpu.memory_space<vmem>>) attributes {dimension_semantics = [#tpu.dimension_semantics<parallel>], iteration_bounds = array<i64: 1>, scalar_prefetch = 0 : i64, scratch_operands = 0 : i64, tpu.core_type = #tpu.core_type<tc>, window_params = [{transform_indices = @transform_0, window_bounds = array<i64: 16, 128>}, {pipeline_mode = #tpu.pipeline_mode<synchronous>, transform_indices = @transform_1, window_bounds = array<i64: 128, 96>}, {transform_indices = @transform_2, window_bounds = array<i64: 2, 8, 32>}]} {
    %c0 = arith.constant 0 : index
    %c0_0 = arith.constant 0 : index
    %0 = vector.load %arg1[%c0, %c0_0] : memref<16x128xf32, #tpu.memory_space<vmem>>, vector<16x128xf32>
    %1 = arith.truncf %0 : vector<16x128xf32> to vector<16x128xbf16>
    %c0_1 = arith.constant 0 : index
    %c0_2 = arith.constant 0 : index
    %2 = vector.load %arg2[%c0_1, %c0_2] : memref<128x96xbf16, #tpu.memory_space<vmem>>, vector<128x96xbf16>
    %cst = arith.constant dense<0.000000e+00> : vector<16x96xf32>
    %3 = tpu.matmul %1, %2, %cst {dimension_numbers = #tpu.dot_dimension_numbers<[1], [0], [0], [1], [0, 0, 1, 1], [], []>} : vector<16x128xbf16>, vector<128x96xbf16>, vector<16x96xf32> -> vector<16x96xf32>
    %4 = vector.shape_cast %3 : vector<16x96xf32> to vector<2x8x96xf32>
    %5 = vector.extract_strided_slice %4 {offsets = [0, 0, 0], sizes = [2, 8, 32], strides = [1, 1, 1]} : vector<2x8x96xf32> to vector<2x8x32xf32>
    %6 = arith.truncf %5 : vector<2x8x32xf32> to vector<2x8x32xbf16>
    %7 = vector.extract_strided_slice %4 {offsets = [0, 0, 32], sizes = [2, 8, 32], strides = [1, 1, 1]} : vector<2x8x96xf32> to vector<2x8x32xf32>
    %8 = arith.truncf %7 : vector<2x8x32xf32> to vector<2x8x32xbf16>
    %9 = vector.extract_strided_slice %4 {offsets = [0, 0, 64], sizes = [2, 8, 32], strides = [1, 1, 1]} : vector<2x8x96xf32> to vector<2x8x32xf32>
    %10 = arith.truncf %9 : vector<2x8x32xf32> to vector<2x8x32xbf16>
    "tpu.trace_start"() <{level = 10 : i32, message = "bqh,bkh->bqk"}> : () -> ()
    %cst_3 = arith.constant dense<0.000000e+00> : vector<2x8x8xf32>
    %11 = tpu.matmul %8, %6, %cst_3 {dimension_numbers = #tpu.dot_dimension_numbers<[2], [2], [1], [1], [0, 0, 0, 1, 1, 1], [0], [0]>} : vector<2x8x32xbf16>, vector<2x8x32xbf16>, vector<2x8x8xf32> -> vector<2x8x8xf32>
    "tpu.trace_stop"() : () -> ()
    %12 = tpu.iota {dimensions = array<i32: 0>} : vector<8x8xi32>
    %13 = tpu.iota {dimensions = array<i32: 1>} : vector<8x8xi32>
    %14 = arith.cmpi sle, %13, %12 : vector<8x8xi32>
    %15 = vector.shape_cast %14 : vector<8x8xi1> to vector<1x8x8xi1>
    %cst_4 = arith.constant -1.000000e+30 : f32
    %16 = vector.shape_cast %15 : vector<1x8x8xi1> to vector<1x8x8xi1>
    %17 = vector.broadcast %16 : vector<1x8x8xi1> to vector<2x8x8xi1>
    %18 = vector.broadcast %cst_4 : f32 to vector<2x8x8xf32>
    %19 = arith.select %17, %11, %18 : vector<2x8x8xi1>, vector<2x8x8xf32>
    %cst_5 = arith.constant dense<0xFF800000> : vector<2x8xf32>
    %20 = vector.multi_reduction <maximumf>, %19, %cst_5 [2] : vector<2x8x8xf32> to vector<2x8xf32>
    %21 = vector.shape_cast %20 : vector<2x8xf32> to vector<2x8x1xf32>
    %22 = vector.broadcast %21 : vector<2x8x1xf32> to vector<2x8x8xf32>
    %23 = arith.subf %19, %22 : vector<2x8x8xf32>
    %24 = math.exp %23 : vector<2x8x8xf32>
    %cst_6 = arith.constant dense<0.000000e+00> : vector<2x8xf32>
    %25 = vector.multi_reduction <add>, %24, %cst_6 [2] : vector<2x8x8xf32> to vector<2x8xf32>
    %26 = vector.shape_cast %25 : vector<2x8xf32> to vector<2x8x1xf32>
    %27 = tpu.reciprocal %26 {approx = true} : vector<2x8x1xf32> -> vector<2x8x1xf32>
    %28 = vector.broadcast %27 : vector<2x8x1xf32> to vector<2x8x8xf32>
    %29 = arith.mulf %24, %28 : vector<2x8x8xf32>
    %30 = arith.truncf %29 : vector<2x8x8xf32> to vector<2x8x8xbf16>
    "tpu.trace_start"() <{level = 10 : i32, message = "bqk,bkh->bqh"}> : () -> ()
    %cst_7 = arith.constant dense<0.000000e+00> : vector<2x8x32xf32>
    %31 = tpu.matmul %30, %10, %cst_7 {dimension_numbers = #tpu.dot_dimension_numbers<[2], [1], [1], [2], [0, 0, 0, 1, 1, 2], [0], [0]>} : vector<2x8x8xbf16>, vector<2x8x32xbf16>, vector<2x8x32xf32> -> vector<2x8x32xf32>
    "tpu.trace_stop"() : () -> ()
    %c0_8 = arith.constant 0 : index
    %c0_9 = arith.constant 0 : index
    %c0_10 = arith.constant 0 : index
    %32 = vector.load %arg3[%c0_8, %c0_9, %c0_10] : memref<2x8x32xf32, #tpu.memory_space<vmem>>, vector<2x8x32xf32>
    tpu.vector_store %arg3[%c0_8, %c0_9, %c0_10], %31 {strides = array<i32>} : memref<2x8x32xf32, #tpu.memory_space<vmem>>, vector<2x8x32xf32>,
    return
  }
  func.func @transform_0(%arg0: i32) -> (i32, i32) {
    %c0_i32 = arith.constant 0 : i32
    %c0_i32_0 = arith.constant 0 : i32
    return %arg0, %c0_i32 : i32, i32
  }
  func.func @transform_1(%arg0: i32) -> (i32, i32) {
    %c0_i32 = arith.constant 0 : i32
    %c0_i32_0 = arith.constant 0 : i32
    %c0_i32_1 = arith.constant 0 : i32
    return %c0_i32, %c0_i32_0 : i32, i32
  }
  func.func @transform_2(%arg0: i32) -> (i32, i32, i32) {
    %c0_i32 = arith.constant 0 : i32
    %c0_i32_0 = arith.constant 0 : i32
    %c0_i32_1 = arith.constant 0 : i32
    return %arg0, %c0_i32, %c0_i32_0 : i32, i32, i32
  }
}

</mosaic_0001>

<bundles_post_ra>
// kernel: tpu_custom_call.1
= control target key start
LH: loop header
LB: loop body
LE: loop exit
PB: predicated region body
PF: predicated region fallthrough
CT: control target
= control target key end

     0   :  { %v491_v1 = vmov 0.0   ;;  %vm492_vm0 = vmmov 0   ;;  %s591_s0 = inlined_call_operand.vmem [shape: f32[16,128], index: 0, kind: input, shape index: {}]   ;;  %s592_s1 = inlined_call_operand.vmem [shape: bf16[128,96], index: 1, kind: input, shape index: {}]   ;;  %s593_s2 = inlined_call_operand.hbm [shape: f32[2,8,32], index: 2, kind: output, shape index: {}]  }
   0x1   :  { %v451_v0 = vld [vmem:[%s592_s1] sm:$0xff]   ;;  %400 = vmatprep.subr.bf16.mxu0 %v491_v1  ;;  %420 = vmatprep.subr.bf16.mxu1 %v491_v1  ;;  %v452_v2 = vld [vmem:[%s592_s1 + $0x8] sm:$0xff]   ;;  %v453_v3 = vld [vmem:[%s592_s1 + $0x10] sm:$0xff]  }
   0x2   :  { %401 = vmatpush3.bf16.msra.mxu0 %v451_v0  ;;  %416 = vmatprep.mubr.msk.bf16.mxu0 %vm492_vm0, %v491_v1 }
   0x3   :  { %402 = vmatprep.subr.bf16.mxu0 %v491_v1  ;;  %422 = vmatprep.mubr.msk.bf16.mxu1 %vm492_vm0, %v491_v1 }
   0x6   :  { %403 = vmatpush3.bf16.msra.mxu0 %v452_v2 }
   0x7   :  { %404 = vmatprep.subr.bf16.mxu0 %v491_v1 }
   0x8   :  { %7 = vsyncpa [#allocation3], 0  ;;  %v454_v4 = vld [vmem:[%s592_s1 + $0x18] sm:$0xff]   ;;  %v455_v5 = vld [vmem:[%s592_s1 + $0x20] sm:$0xff]   ;;  %vm126_vm1 = vcmask 261120   ;;  %s493_s29 = smov 96   ;;  %v222_v22 = vlaneseq }
   0x9   :  { %v456_v6 = vld [vmem:[%s592_s1 + $0x28] sm:$0xff]   ;;  %v457_v7 = vld [vmem:[%s592_s1 + $0x30] sm:$0xff]   ;;  %v458_v8 = vld [vmem:[%s592_s1 + $0x38] sm:$0xff]   ;;  %vm231_vm3 = vcmask 64512   ;;  %vm261_vm4 = vcmask 1043456   ;;  %s495_s1 = smov [#allocation2]  }
   0xa   :  { %405 = vmatpush3.bf16.msra.mxu0 %v453_v3  ;;  %v13_v9 = vld [vmem:[%s591_s0] sm:$0xff]  ;;  %v14_v10 = vld [vmem:[%s591_s0 + $0x8] sm:$0xff]  ;;  %v223_v23 = vshrl.u32 %v222_v22, 7  ;;  %v225_v24 = vand.u32 127, %v222_v22  ;;  %s494_s0 = smov 64   ;;  %s360_s30 = sshll.u32 %s495_s1, 4  ;;  %s361_s30 = int_to_ptr.vmem [resolvable:$true] %s360_s30 }
   0xb   :  { %406 = vmatprep.subr.bf16.mxu0 %v491_v1  ;;  %v15_v11 = vpack.c.bf16 %v14_v10, %v13_v9  ;;  %s467_s3 = scalar_lea.vmem %s361_s30, 256  ;;  %p472_p1 = scmp.lt.s32.totalorder %s361_s30, %s361_s30 }
   0xc   :  { %vm226_vm2 = vcmp.le.s32.totalorder %v225_v24, %v223_v23  ;;  %p468_p0 = scmp.ne.s32.totalorder %s361_s30, %s467_s3  ;;  %p473_p2 = scmp.lt.s32.totalorder %s467_s3, %s467_s3 }
   0xe   :  { %407 = vmatpush3.bf16.msra.mxu0 %v454_v4  ;;  %p474_p3 = por %p473_p2, %p472_p1 }
   0xf   :  { %408 = vmatprep.subr.bf16.mxu0 %v491_v1 }
  0x10   :  { %p475_p4 = pnand %p474_p3, %p468_p0 }
  0x12   :  { %409 = vmatpush3.bf16.msra.mxu0 %v455_v5 }
  0x13   :  { %410 = vmatprep.subr.bf16.mxu0 %v491_v1 }
  0x16   :  { %411 = vmatpush3.bf16.msra.mxu0 %v456_v6 }
  0x17   :  { %412 = vmatprep.subr.bf16.mxu0 %v491_v1 }
  0x1a   :  { %413 = vmatpush3.bf16.msra.mxu0 %v457_v7 }
  0x1b   :  { %414 = vmatprep.subr.bf16.mxu0 %v491_v1 }
  0x1e   :  { %415 = vmatpush3.bf16.msra.mxu0 %v458_v8 }
  0x21   :  { %417 = vmatmul.mubr.bf16.vlgmr.msra.gmra.mrb[0].mxu0 %v15_v11 }
  0xf4   :  { %v114_v12 = vpop.f32.mrb[0].mxu0 }
  0xf5   :  { %v121_v13 = vpack.c.bf16 %v114_v12, %v114_v12  ;;  %v418_v14 = vpop.f32.mrb[1].mxu0 }
  0xf6   :  { %v117_v15 = vpop.f32.mrb[2].mxu0 }
  0xf7   :  { %124 = vrot.lane.b32.xlu0 %v121_v13, %s493_s29  ;;  %v419_v16 = vpop.f32.mrb[3].mxu0  ;;  %v131_v17 = vsel %vm126_vm1, %v121_v13, 0  ;;  %v122_v18 = vpack.c.bf16 %v117_v15, %v117_v15 }
  0xf8   :  { %421 = vmatpush3.bf16.xpose.msra.mxu1 %v131_v17 }
  0xf9   :  { %426 = vmatprep.subr.bf16.mxu1 %v491_v1  ;;  %v180_v20 = vsel %vm126_vm1, %v122_v18, 0 }
  0xfb   :  { %174 = vrot.lane.b32.xlu0 %v122_v18, %s493_s29 }
 0x169   :  { %v125_v19 = vpop.permute.xlu0 %124 }
 0x16a   :  { %423 = vmatmul.mubr.msk.bf16.vlgmr.msra.gmra.mrb[0].mxu1 %vm126_vm1, %v125_v19 }
 0x16b   :  { %427 = vmatpush3.bf16.xpose.msra.mxu1 %v180_v20  ;;  %428 = vmatprep.mubr.msk.bf16.mxu1 %vm492_vm0, %v491_v1 }
 0x16c   :  { %432 = vmatprep.subr.bf16.mxu1 %v491_v1 }
 0x16d   :  { %v175_v21 = vpop.permute.xlu0 %174 }
 0x172   :  { %429 = vmatmul.mubr.msk.bf16.vlgmr.msra.gmra.mrb[4].mxu1 %vm126_vm1, %v175_v21 }
 0x173   :  { %434 = vmatprep.mubr.msk.bf16.mxu1 %vm492_vm0, %v491_v1 }
 0x23d   :  { %v167_v25 = vpop.f32.mrb[0].mxu1 }
 0x23e   :  { %v229_v26 = vsel %vm226_vm2, %v167_v25, -1e+30  ;;  %v424_v27 = vpop.f32.mrb[1].mxu1 }
 0x23f   :  { %v170_v28 = vpop.f32.mrb[2].mxu1  ;;  %v232_v29 = vsel %vm231_vm3, %v229_v26, -inf }
 0x240   :  { %233 = vmax.xlane.f32.xlu1 %v232_v29  ;;  %v425_v30 = vpop.f32.mrb[3].mxu1 }
 0x245   :  { %v216_v31 = vpop.f32.mrb[4].mxu1 }
 0x246   :  { %v230_v32 = vsel %vm226_vm2, %v216_v31, -1e+30  ;;  %v430_v33 = vpop.f32.mrb[5].mxu1 }
 0x247   :  { %v219_v34 = vpop.f32.mrb[6].mxu1  ;;  %v235_v35 = vsel %vm231_vm3, %v230_v32, -inf }
 0x248   :  { %236 = vmax.xlane.f32.xlu1 %v235_v35  ;;  %v431_v36 = vpop.f32.mrb[7].mxu1 }
 0x259   :  { %256 = vrot.lane.b32.xlu1 %v121_v13, %s494_s0 }
 0x2cd   :  { %v234_v37 = vpop.xlane.xlu1 %233 }
 0x2ce   :  { %v238_v38 = vsub.f32 %v229_v26, %v234_v37 }
 0x2d0   :  { %v240_v39 = vmul.f32 1.442695, %v238_v38 }
 0x2d2   :  { %459 = vpow2.f32 %v240_v39 }
 0x2d5   :  { %v237_v40 = vpop.xlane.xlu1 %236 }
 0x2d6   :  { %v239_v41 = vsub.f32 %v230_v32, %v237_v40 }
 0x2d8   :  { %v242_v42 = vmul.f32 1.442695, %v239_v41 }
 0x2d9   :  { %v257_v43 = vpop.permute.xlu1 %256 }
 0x2da   :  { %461 = vpow2.f32 %v242_v42  ;;  %v263_v44 = vsel %vm261_vm4, %v257_v43, 0 }
 0x2db   :  { %433 = vmatpush3.bf16.msra.mxu1 %v263_v44 }
 0x2dc   :  { %v460_v45 = vpop.eup %459  ;;  %438 = vmatprep.subr.bf16.mxu1 %v491_v1 }
 0x2dd   :  { %v244_v46 = vsel %vm231_vm3, %v460_v45, 0.0 }
 0x2de   :  { %245 = vadd.xlane.f32.xlu0 %v244_v46 }
 0x2e4   :  { %v462_v47 = vpop.eup %461 }
 0x2e5   :  { %v247_v48 = vsel %vm231_vm3, %v462_v47, 0.0 }
 0x2e6   :  { %248 = vadd.xlane.f32.xlu1 %v247_v48 }
 0x2f7   :  { %305 = vrot.lane.b32.xlu1 %v122_v18, %s494_s0 }
 0x36b   :  { %v246_v49 = vpop.xlane.xlu0 %245 }
 0x36c   :  { %463 = vrcp.f32 %v246_v49 }
 0x373   :  { %v249_v50 = vpop.xlane.xlu1 %248 }
 0x374   :  { %465 = vrcp.f32 %v249_v50 }
 0x376   :  { %v464_v51 = vpop.eup %463 }
 0x377   :  { %v252_v52 = vmul.f32 %v464_v51, %v460_v45  ;;  %v306_v53 = vpop.permute.xlu1 %305 }
 0x378   :  { %v311_v55 = vsel %vm261_vm4, %v306_v53, 0 }
 0x379   :  { %v254_v54 = vpack.c.bf16 %v252_v52, %v252_v52 }
 0x37b   :  { %435 = vmatmul.mubr.msk.bf16.vlgmr.msra.gmra.mrb[8].mxu1 %vm231_vm3, %v254_v54 }
 0x37c   :  { %439 = vmatpush3.bf16.msra.mxu1 %v311_v55  ;;  %440 = vmatprep.mubr.msk.bf16.mxu1 %vm492_vm0, %v491_v1 }
 0x37e   :  { %v466_v56 = vpop.eup %465 }
 0x37f   :  { %v253_v57 = vmul.f32 %v466_v56, %v462_v47 }
 0x381   :  { %v255_v58 = vpack.c.bf16 %v253_v57, %v253_v57 }
 0x383   :  { %441 = vmatmul.mubr.msk.bf16.vlgmr.msra.gmra.mrb[12].mxu1 %vm231_vm3, %v255_v58 }
 0x44e   :  { %v299_v59 = vpop.f32.mrb[8].mxu1 }
 0x44f   :  { %353 = vst.msk [vmem:[#allocation2] sm:$0xff] %vm126_vm1, %v299_v59  ;;  %v436_v60 = vpop.f32.mrb[9].mxu1 }
 0x450   :  { %v302_v61 = vpop.f32.mrb[10].mxu1 }
 0x451   :  { %v437_v62 = vpop.f32.mrb[11].mxu1 }
 0x456   :  { %v347_v63 = vpop.f32.mrb[12].mxu1 }
 0x457   :  { %354 = vst.msk [vmem:[#allocation2 + $0x8] sm:$0xff] %vm126_vm1, %v347_v63  ;;  %v442_v0 = vpop.f32.mrb[13].mxu1 }
 0x458   :  { %v350_v2 = vpop.f32.mrb[14].mxu1 }
 0x459   :  { %478 = shalt.err (!%p475_p4)
}
 0x45a   :  { %s479_s6 = scalar_lea.hbm %s593_s2, 256 }
 0x45b   :  { %p480_p5 = scmp.ne.s32.totalorder %s593_s2, %s479_s6  ;;  %p483_p6 = scmp.lt.u32.totalorder %s479_s6, %s593_s2 }
 0x45d   :  { %p485_p7 = pnand %p483_p6, %p480_p5 }
 0x45f   :  { %488 = shalt.err (!%p485_p7)
}
 0x460   :  { %s496_s11 = smov 128   ;;  %s497_s12 = smov 8   ;;  %v443_v1 = vpop.f32.mrb[15].mxu1 }
 0x461   :  { %366 = dma.vmem_to_hbm [thread:$0]  %s361_s30, 256, %s593_s2, [#allocation3], %s496_s11, %s496_s11, %s497_s12  }
 0x462   :  { %489 = dma.done.wait [#allocation3], 256  }
 0x463   :  { %490 = vsyncadd [#allocation3], 4294967040 }
 0x464   :  { %370 = vsyncpa [#allocation3], 1 }

</bundles_post_ra>
